<compile_context>
chip_gen: v7x
topology: tpu7x:2x2x1
jax: 0.10.0
libtpu: 0.0.40
codegen_flags: <defaults>
</compile_context>

<pallas_src>
import math

import jax
import jax.numpy as jnp
import numpy as np
from jax.experimental import pallas as pl
from jax.experimental.pallas import tpu as pltpu


def _query_vmem_capacity_bytes():
    try:
        return int(pltpu.get_tpu_info().vmem_capacity_bytes)
    except Exception:
        return 64 * 1024 * 1024          # conservative: v7x per-TensorCore VMEM


_VMEM_CAPACITY = _query_vmem_capacity_bytes()
if _VMEM_CAPACITY >= 100 * 1024 * 1024:          # v5e / v6e: 128 MiB physical VMEM
    _TARGET_BLOCK_BYTES = 6 * 1024 * 1024        # fewer grid steps on big parts
    _VMEM_BUDGET = 64 * 1024 * 1024
else:                                            # v7x (64 MiB) or unknown
    _TARGET_BLOCK_BYTES = 2 * 1024 * 1024
    _VMEM_BUDGET = 28 * 1024 * 1024
_VMEM_LIMIT_FLOOR = 16 * 1024 * 1024             # v5e default scoped VMEM
_MIN_EVEN_SPLIT_BYTES = 512 * 1024               # don't shrink blocks below this
                                                 # just to even out the step count

_HIGHEST = jax.lax.Precision.HIGHEST


# ----------------------------------------------------------------------------
# Kernels
# ----------------------------------------------------------------------------
def _senet_kernel_chw(x_ref, w1t_ref, w2t_ref, o_ref):
    """Channel-major path.  x_ref/o_ref: (Bt, C, HW); w1t_ref: (C, Cr) = W1.T/HW;
    w2t_ref: (Cr, C).  Pool = channel sums of relu(x) (1/HW folded into w1t)."""
    pooled = jnp.sum(jnp.maximum(x_ref[...], 0.0), axis=2)            # (Bt, C)
    h = jnp.maximum(
        jnp.dot(pooled, w1t_ref[...], preferred_element_type=jnp.float32,
                precision=_HIGHEST), 0.0)                             # (Bt, Cr)
    s = jax.nn.sigmoid(
        jnp.dot(h, w2t_ref[...], preferred_element_type=jnp.float32,
                precision=_HIGHEST))                                  # (Bt, C)
    # Re-apply the (free, VPU) ReLU at the gate instead of keeping a
    # block-sized relu(x) temp live across the reduce.
    o_ref[...] = jnp.maximum(x_ref[...], 0.0) * s[:, :, None]


def _senet_kernel_flat(x_ref, pool_ref, expand_ref, w1t_ref, w2t_ref, o_ref):
    """Flattened lane-dense path.

    x_ref/o_ref : (Bt, C*HW)  contiguous per batch element, lane-dense.
    pool_ref    : (C*HW, C)   block one-hot (1.0) -> channel sums via MXU.
    expand_ref  : (C, C*HW)   block one-hot (1.0) -> per-channel broadcast via MXU.
    w1t_ref     : (C, Cr) = W1.T/HW ;  w2t_ref: (Cr, C).
    """
    pooled = jnp.dot(jnp.maximum(x_ref[...], 0.0), pool_ref[...],
                     preferred_element_type=jnp.float32,
                     precision=_HIGHEST)                               # (Bt, C)
    h = jnp.maximum(
        jnp.dot(pooled, w1t_ref[...], preferred_element_type=jnp.float32,
                precision=_HIGHEST), 0.0)                              # (Bt, Cr)
    s = jax.nn.sigmoid(
        jnp.dot(h, w2t_ref[...], preferred_element_type=jnp.float32,
                precision=_HIGHEST))                                   # (Bt, C)
    gate = jnp.dot(s, expand_ref[...], preferred_element_type=jnp.float32,
                   precision=_HIGHEST)                                 # (Bt, C*HW)
    o_ref[...] = jnp.maximum(x_ref[...], 0.0) * gate


# ----------------------------------------------------------------------------
# Tiling helpers
# ----------------------------------------------------------------------------
def _pick_batch_tile(B, per_elem_bytes, sublane_constrained):
    """Pick the batch tile Bt: (a) largest divisor of B whose x block stays near
    the per-generation target, (b) a legal sublane size when Bt is the 2nd-minor
    block dim (2-D flattened blocks), (c) expose >= 2 grid steps (even count
    preferred) so the parallel batch axis can split across v7x's two cores."""
    divisors = [d for d in range(1, B + 1) if B % d == 0]
    if sublane_constrained:
        legal = [d for d in divisors if d == B or d % 8 == 0]
        divisors = legal or [B]
    fitting = [d for d in divisors if d * per_elem_bytes <= _TARGET_BLOCK_BYTES]
    if not fitting:
        return min(divisors)            # even one element exceeds the target
    bt = max(fitting)
    steps = lambda d: B // d
    if steps(bt) < 2:                   # expose >= 2 grid steps when B allows
        cands = [d for d in fitting if steps(d) >= 2]
        if cands:
            bt = max(cands)
    if steps(bt) >= 2 and steps(bt) % 2 == 1:   # prefer an even step count
        cands = [d for d in fitting
                 if steps(d) % 2 == 0 and d * per_elem_bytes >= _MIN_EVEN_SPLIT_BYTES]
        if cands:
            bt = max(cands)
    return bt


# ----------------------------------------------------------------------------
# Forward
# ----------------------------------------------------------------------------
def _senet_forward_impl(x_nchw, w1, w2):
    """x_nchw: (B, C, H, W) f32 (donated); w1: (C//r, C); w2: (C, C//r)."""
    B, C, H, W = x_nchw.shape
    HW = H * W
    CHW = C * HW
    Cr = w1.shape[0]

    # Fold the mean's 1/HW into W1.T so the kernels only need channel sums.
    w1t = (w1.T * (1.0 / HW)).astype(jnp.float32)       # (C, Cr)
    w2t = w2.T.astype(jnp.float32)                      # (Cr, C)
    fc_bytes = 2 * (2 * C * Cr * 4)                     # both FCs, double-buffered

    per_elem_bytes = CHW * 4
    pool_const_bytes = 2 * (CHW * C * 4)                # pool + expand matrices

    lane_dense_hw = (HW % 128 == 0)

    # Flattened lane-dense path is attractive only when HW is lane-hostile,
    # C*HW is a multiple of 128, and the one-hot matrices fit the VMEM budget.
    flat_ok = False
    bt_flat = 1
    if (not lane_dense_hw) and (CHW % 128 == 0):
        bt_flat = _pick_batch_tile(B, per_elem_bytes, sublane_constrained=True)
        flat_needed = (5 * bt_flat * per_elem_bytes + 2 * pool_const_bytes
                       + fc_bytes + (2 << 20))
        flat_ok = flat_needed <= _VMEM_BUDGET

    if not flat_ok:
        # ---- (Bt, C, HW) path: lane-dense when HW % 128 == 0, otherwise a
        # correct fallback (masked stores but still zero wrapper copies). ----
        x_k = x_nchw.reshape(B, C, HW)
        bt = _pick_batch_tile(B, per_elem_bytes, sublane_constrained=False)
        grid = (B // bt,)
        block = (bt, C, HW)
        # 2x in + 2x out pipeline buffers + 1 compute-temp block + weights.
        vmem_needed = 5 * bt * per_elem_bytes + fc_bytes + (2 << 20)
        vmem_limit = int(min(max(vmem_needed, _VMEM_LIMIT_FLOOR), _VMEM_BUDGET))
        out_k = pl.pallas_call(
            _senet_kernel_chw,
            out_shape=jax.ShapeDtypeStruct((B, C, HW), jnp.float32),
            grid_spec=pltpu.PrefetchScalarGridSpec(
                num_scalar_prefetch=0,
                grid=grid,
                in_specs=[
                    pl.BlockSpec(block, lambda b: (b, 0, 0)),
                    pl.BlockSpec((C, Cr), lambda b: (0, 0)),
                    pl.BlockSpec((Cr, C), lambda b: (0, 0)),
                ],
                out_specs=pl.BlockSpec(block, lambda b: (b, 0, 0)),
            ),
            compiler_params=pltpu.CompilerParams(
                dimension_semantics=("parallel",),
                vmem_limit_bytes=vmem_limit),
            input_output_aliases={0: 0},   # gate x in place (x is donated)
        )(x_k, w1t, w2t)
        return out_k.reshape(B, C, H, W)

    # ---- Flattened lane-dense path: (Bt, C*HW) blocks; pooling and the gate
    # broadcast are done with block-one-hot matmuls on the idle MXU. ----
    x_k = x_nchw.reshape(B, CHW)
    eye = jnp.eye(C, dtype=jnp.float32)
    pool_mat = jnp.repeat(eye, HW, axis=0)              # (CHW, C): channel sums
    expand_mat = pool_mat.T                             # (C, CHW): channel broadcast
    grid = (B // bt_flat,)
    block = (bt_flat, CHW)
    vmem_needed = (5 * bt_flat * per_elem_bytes + 2 * pool_const_bytes
                   + fc_bytes + (2 << 20))
    vmem_limit = int(min(max(vmem_needed, _VMEM_LIMIT_FLOOR), _VMEM_BUDGET))
    out_k = pl.pallas_call(
        _senet_kernel_flat,
        out_shape=jax.ShapeDtypeStruct((B, CHW), jnp.float32),
        grid_spec=pltpu.PrefetchScalarGridSpec(
            num_scalar_prefetch=0,
            grid=grid,
            in_specs=[
                pl.BlockSpec(block, lambda b: (b, 0)),
                pl.BlockSpec((CHW, C), lambda b: (0, 0)),
                pl.BlockSpec((C, CHW), lambda b: (0, 0)),
                pl.BlockSpec((C, Cr), lambda b: (0, 0)),
                pl.BlockSpec((Cr, C), lambda b: (0, 0)),
            ],
            out_specs=pl.BlockSpec(block, lambda b: (b, 0)),
        ),
        compiler_params=pltpu.CompilerParams(
            dimension_semantics=("parallel",),
            vmem_limit_bytes=vmem_limit),
        input_output_aliases={0: 0},       # gate x in place (x is donated)
    )(x_k, pool_mat, expand_mat, w1t, w2t)
    return out_k.reshape(B, C, H, W)


# Donate x so the aliased pallas output reuses its HBM buffer end to end.
# NOTE: callers must not reuse x after calling senet_forward.
senet_forward = jax.jit(_senet_forward_impl, donate_argnums=(0,))


# ----------------------------------------------------------------------------
# Reference + test
# ----------------------------------------------------------------------------
def senet_reference(x, w1, w2):
    """Pure-JAX reference mirroring the torch forward (f32-exact dots)."""
    xr = jnp.maximum(x, 0.0)
    avg = jnp.mean(xr, axis=(2, 3))
    h = jnp.maximum(jnp.dot(avg, w1.T, precision=_HIGHEST), 0.0)
    s = jax.nn.sigmoid(jnp.dot(h, w2.T, precision=_HIGHEST))
    return xr * s[:, :, None, None]


def _make_case(key, B, C, H, W, ratio):
    Cr = max(C // ratio, 1)
    kx, k1, k2 = jax.random.split(key, 3)
    x = jax.random.normal(kx, (B, C, H, W), dtype=jnp.float32)
    b1 = 1.0 / math.sqrt(C)
    b2 = 1.0 / math.sqrt(Cr)
    w1 = jax.random.uniform(k1, (Cr, C), minval=-b1, maxval=b1, dtype=jnp.float32)
    w2 = jax.random.uniform(k2, (C, Cr), minval=-b2, maxval=b2, dtype=jnp.float32)
    return x, w1, w2


if __name__ == "__main__":
    key = jax.random.PRNGKey(0)
    k1, k2 = jax.random.split(key)

    # Case 1: HW = 256 (lane-aligned) -> (Bt, C, HW) path, 2 parallel grid steps.
    x, w1, w2 = _make_case(k1, B=2, C=32, H=16, W=16, ratio=16)
    ref = senet_reference(x, w1, w2)                 # computed before x is donated
    out = jax.block_until_ready(senet_forward(x, w1, w2))
    np.testing.assert_allclose(np.asarray(out), np.asarray(ref),
                               rtol=1e-5, atol=1e-5)

    # Case 2: HW = 49 (lane-hostile), C = 128 -> flattened lane-dense
    # (Bt, C*HW) path with one-hot matmul pooling/broadcast (no wrapper transpose).
    x2, w12, w22 = _make_case(k2, B=2, C=128, H=7, W=7, ratio=16)
    ref2 = senet_reference(x2, w12, w22)
    out2 = jax.block_until_ready(senet_forward(x2, w12, w22))
    np.testing.assert_allclose(np.asarray(out2), np.asarray(ref2),
                               rtol=1e-5, atol=1e-5)

    print("KERNEL_OK")
</pallas_src>

<mosaic_0001>
module attributes {stable_mosaic.version = 11 : i64} {
  func.func @_senet_kernel_chw(%arg0: i32, %arg1: memref<1x32x256xf32, #tpu.memory_space<vmem>>, %arg2: memref<32x2xf32, #tpu.memory_space<vmem>>, %arg3: memref<2x32xf32, #tpu.memory_space<vmem>>, %arg4: memref<1x32x256xf32, #tpu.memory_space<vmem>>) attributes {dimension_semantics = [#tpu.dimension_semantics<parallel>], iteration_bounds = array<i64: 2>, scalar_prefetch = 0 : i64, scratch_operands = 0 : i64, tpu.core_type = #tpu.core_type<tc>, window_params = [{transform_indices = @transform_0, window_bounds = array<i64: 1, 32, 256>}, {pipeline_mode = #tpu.pipeline_mode<synchronous>, transform_indices = @transform_1, window_bounds = array<i64: 32, 2>}, {pipeline_mode = #tpu.pipeline_mode<synchronous>, transform_indices = @transform_2, window_bounds = array<i64: 2, 32>}, {transform_indices = @transform_3, window_bounds = array<i64: 1, 32, 256>}]} {
    %c0 = arith.constant 0 : index
    %c0_0 = arith.constant 0 : index
    %c0_1 = arith.constant 0 : index
    %0 = vector.load %arg1[%c0, %c0_0, %c0_1] : memref<1x32x256xf32, #tpu.memory_space<vmem>>, vector<1x32x256xf32>
    %cst = arith.constant 0.000000e+00 : f32
    %1 = vector.broadcast %cst : f32 to vector<1x32x256xf32>
    %2 = arith.maximumf %0, %1 : vector<1x32x256xf32>
    %cst_2 = arith.constant dense<0.000000e+00> : vector<1x32xf32>
    %3 = vector.multi_reduction <add>, %2, %cst_2 [2] : vector<1x32x256xf32> to vector<1x32xf32>
    %c0_3 = arith.constant 0 : index
    %c0_4 = arith.constant 0 : index
    %4 = vector.load %arg2[%c0_3, %c0_4] : memref<32x2xf32, #tpu.memory_space<vmem>>, vector<32x2xf32>
    %cst_5 = arith.constant dense<0.000000e+00> : vector<1x2xf32>
    %5 = tpu.matmul %3, %4, %cst_5 {dimension_numbers = #tpu.dot_dimension_numbers<[1], [0], [0], [1], [0, 0, 1, 1], [], []>, precision = #tpu.contract_precision<fp32>} : vector<1x32xf32>, vector<32x2xf32>, vector<1x2xf32> -> vector<1x2xf32>
    %cst_6 = arith.constant 0.000000e+00 : f32
    %6 = vector.broadcast %cst_6 : f32 to vector<1x2xf32>
    %7 = arith.maximumf %5, %6 : vector<1x2xf32>
    %c0_7 = arith.constant 0 : index
    %c0_8 = arith.constant 0 : index
    %8 = vector.load %arg3[%c0_7, %c0_8] : memref<2x32xf32, #tpu.memory_space<vmem>>, vector<2x32xf32>
    %cst_9 = arith.constant dense<0.000000e+00> : vector<1x32xf32>
    %9 = tpu.matmul %7, %8, %cst_9 {dimension_numbers = #tpu.dot_dimension_numbers<[1], [0], [0], [1], [0, 0, 1, 1], [], []>, precision = #tpu.contract_precision<fp32>} : vector<1x2xf32>, vector<2x32xf32>, vector<1x32xf32> -> vector<1x32xf32>
    %10 = arith.negf %9 : vector<1x32xf32>
    %11 = math.exp %10 : vector<1x32xf32>
    %cst_10 = arith.constant 1.000000e+00 : f32
    %12 = vector.broadcast %cst_10 : f32 to vector<1x32xf32>
    %13 = arith.addf %12, %11 : vector<1x32xf32>
    %14 = arith.divf %12, %13 : vector<1x32xf32>
    %c0_11 = arith.constant 0 : index
    %c0_12 = arith.constant 0 : index
    %c0_13 = arith.constant 0 : index
    %15 = vector.load %arg1[%c0_11, %c0_12, %c0_13] : memref<1x32x256xf32, #tpu.memory_space<vmem>>, vector<1x32x256xf32>
    %cst_14 = arith.constant 0.000000e+00 : f32
    %16 = vector.broadcast %cst_14 : f32 to vector<1x32x256xf32>
    %17 = arith.maximumf %15, %16 : vector<1x32x256xf32>
    %18 = vector.shape_cast %14 : vector<1x32xf32> to vector<1x32x1xf32>
    %19 = vector.broadcast %18 : vector<1x32x1xf32> to vector<1x32x256xf32>
    %20 = arith.mulf %17, %19 : vector<1x32x256xf32>
    %c0_15 = arith.constant 0 : index
    %c0_16 = arith.constant 0 : index
    %c0_17 = arith.constant 0 : index
    %21 = vector.load %arg4[%c0_15, %c0_16, %c0_17] : memref<1x32x256xf32, #tpu.memory_space<vmem>>, vector<1x32x256xf32>
    tpu.vector_store %arg4[%c0_15, %c0_16, %c0_17], %20 {strides = array<i32>} : memref<1x32x256xf32, #tpu.memory_space<vmem>>, vector<1x32x256xf32>,
    return
  }
  func.func @transform_0(%arg0: i32) -> (i32, i32, i32) {
    %c0_i32 = arith.constant 0 : i32
    %c0_i32_0 = arith.constant 0 : i32
    %c0_i32_1 = arith.constant 0 : i32
    return %arg0, %c0_i32, %c0_i32_0 : i32, i32, i32
  }
  func.func @transform_1(%arg0: i32) -> (i32, i32) {
    %c0_i32 = arith.constant 0 : i32
    %c0_i32_0 = arith.constant 0 : i32
    %c0_i32_1 = arith.constant 0 : i32
    return %c0_i32, %c0_i32_0 : i32, i32
  }
  func.func @transform_2(%arg0: i32) -> (i32, i32) {
    %c0_i32 = arith.constant 0 : i32
    %c0_i32_0 = arith.constant 0 : i32
    %c0_i32_1 = arith.constant 0 : i32
    return %c0_i32, %c0_i32_0 : i32, i32
  }
  func.func @transform_3(%arg0: i32) -> (i32, i32, i32) {
    %c0_i32 = arith.constant 0 : i32
    %c0_i32_0 = arith.constant 0 : i32
    %c0_i32_1 = arith.constant 0 : i32
    return %arg0, %c0_i32, %c0_i32_0 : i32, i32, i32
  }
}

</mosaic_0001>

<bundles_post_ra>
// kernel: _senet_forward_impl.1
= control target key start
LH: loop header
LB: loop body
LE: loop exit
PB: predicated region body
PF: predicated region fallthrough
CT: control target
= control target key end

     0   :  { %s1527_s12 = smov 0   ;;  %s1691_s0 = inlined_call_operand.vmem [shape: f32[2,32,256], index: 0, kind: input, shape index: {}, may-alias: {0,3}]   ;;  %s1692_s1 = inlined_call_operand.vmem [shape: f32[32,2], index: 1, kind: input, shape index: {}]   ;;  %s1693_s2 = inlined_call_operand.vmem [shape: f32[2,32], index: 2, kind: input, shape index: {}]   ;;  %s1694_s3 = inlined_call_operand.vmem [shape: f32[2,32,256], index: 3, kind: output, shape index: {}, may-alias: {0,3}]  }
   0x1 LB: > { %s1274_s13 = sadd.s32 4294967295, %s1502_s12   ;;  %p1278_p0 = scmp.ge.s32.totalorder %s1502_s12, 1  ;;  %s1502_s12 = sphi %s1527_s12, %s13_s12  }
   0x2   : > { %p137_p1 = scmp.lt.s32.totalorder %s1502_s12, 3 }
   0x4   : > { %p138_p2 = pnand %p1278_p0, %p137_p1 }
   0x5   : > { %p161_p3 = scmp.lt.s32.totalorder (!%p138_p2), %s1274_s13, 1  ;;  %v199_v20 = vld [vmem:[%s1692_s1] sm:$0xff] (!%p138_p2)  ;;  %v200_v21 = vld [vmem:[%s1692_s1 + $0x8] sm:$0xff] (!%p138_p2)  ;;  %v201_v26 = vld [vmem:[%s1692_s1 + $0x10] sm:$0xff] (!%p138_p2)  ;;  %v1504_v38 = vmov (!%p138_p2), 0.0|0.0   ;;  %vm1505_vm0 = vmmov (!%p138_p2), 0   ;;  %v207_v54 = vlaneseq (!%p138_p2) }
   0x6   : > { %141 = sbr.rel (%p138_p2) target bundleno = 840 (0x348), region = 32  ;;  %v238_v22 = vand.u32 (!%p138_p2), 4294901760, %v199_v20  ;;  %v241_v23 = vand.u32 (!%p138_p2), 4294901760, %v200_v21  ;;  %v202_v27 = vld [vmem:[%s1692_s1 + $0x18] sm:$0xff] (!%p138_p2)  ;;  %v244_v30 = vand.u32 (!%p138_p2), 4294901760, %v201_v26  ;;  %1432 = vmatprep.subr.bf16.mxu0 (!%p138_p2), %v1504_v38  ;;  %1426 = vmatprep.subr.bf16.mxu1 (!%p138_p2), %v1504_v38  ;;  %v1506_v47 = vmov (!%p138_p2), 0.0  }
   0x7   : > { %v247_v31 = vand.u32 (!%p138_p2), 4294901760, %v202_v27  ;;  %1349 = vmatprep.mubr.msk.f32.mxu0 (!%p138_p2), %vm1505_vm0, %v1506_v47  ;;  %1338 = vmatprep.mubr.msk.f32.mxu1 (!%p138_p2), %vm1505_vm0, %v1506_v47  ;;  %v208_v55 = vand.u32 (!%p138_p2), 127, %v207_v54  ;;  %v1625_v56 = vshrl.u32 (!%p138_p2), %v207_v54, 7  ;;  %vm218_vm1 = vcmask (!%p138_p2), 130112  }
   0x8   : > { %v1589_v24 = vsub.f32 (!%p138_p2), %v199_v20, %v238_v22  ;;  %v1591_v25 = vsub.f32 (!%p138_p2), %v200_v21, %v241_v23  ;;  %v1603_v34 = vsub.f32 (!%p138_p2), %v201_v26, %v244_v30  ;;  %v1427_v49 = vpack.c.bf16 (!%p138_p2), %v241_v23, %v238_v22 }
   0x9   : > { %v1605_v35 = vsub.f32 (!%p138_p2), %v202_v27, %v247_v31  ;;  %v1430_v51 = vpack.c.bf16 (!%p138_p2), %v247_v31, %v244_v30  ;;  %v213_v57 = vadd.s32 (!%p138_p2), 4294967288, %v208_v55  ;;  %v220_v58 = vadd.s32 (!%p138_p2), 4294967280, %v208_v55 }
   0xa   : > { %v319_v28 = vand.u32 (!%p138_p2), 4294901760, %v1589_v24  ;;  %v326_v29 = vand.u32 (!%p138_p2), 4294901760, %v1591_v25  ;;  %v333_v39 = vand.u32 (!%p138_p2), 4294901760, %v1603_v34  ;;  %v1439_v48 = vpack.c.bf16 (!%p138_p2), %v1591_v25, %v1589_v24  ;;  %1428 = vmatpush3.bf16.msra.mxu1 (!%p138_p2), %v1427_v49 }
   0xb   : > { %v340_v40 = vand.u32 (!%p138_p2), 4294901760, %v1605_v35  ;;  %1429 = vmatprep.subr.bf16.mxu1 (!%p138_p2), %v1504_v38  ;;  %v1442_v50 = vpack.c.bf16 (!%p138_p2), %v1605_v35, %v1603_v34  ;;  %v227_v59 = vadd.s32 (!%p138_p2), 4294967272, %v208_v55  ;;  %v211_v61 = vsub.s32 (!%p138_p2), %v208_v55, %v1625_v56 }
   0xc   : > { %v320_v32 = vsub.f32 (!%p138_p2), %v1589_v24, %v319_v28  ;;  %v327_v33 = vsub.f32 (!%p138_p2), %v1591_v25, %v326_v29  ;;  %v334_v42 = vsub.f32 (!%p138_p2), %v1603_v34, %v333_v39  ;;  %v1451_v52 = vpack.c.bf16 (!%p138_p2), %v326_v29, %v319_v28 }
   0xd   : > { %s1696_s13 = smov (!%p161_p3, %s1274_s13), 1  ;;  %v341_v43 = vsub.f32 %v1605_v35, %v340_v40  ;;  %v1454_v53 = vpack.c.bf16 %v340_v40, %v333_v39  ;;  %v216_v63 = vsub.s32 %v213_v57, %v1625_v56  ;;  %vm225_vm2 = vcmask 195712  }
   0xe   : > { %s1286_s14 = sshll.u32 %s1696_s13, 6  ;;  %v321_v36 = vand.u32 4294901760, %v320_v32  ;;  %v328_v37 = vand.u32 4294901760, %v327_v33  ;;  %v335_v44 = vand.u32 4294901760, %v334_v42  ;;  %1431 = vmatpush3.bf16.msra.mxu1 %v1430_v51  ;;  %vm232_vm3 = vcmask 261312  }
   0xf   : > { %s165_s17 = scalar_lea.vmem %s1691_s0, %s1286_s14  ;;  %v342_v45 = vand.u32 4294901760, %v341_v43  ;;  %1396 = vmatprep.subr.mxu1 %v1506_v47  ;;  %vm234_vm4 = vcmask 261120   ;;  %v723_v33 = vld [vmem:[%s1693_s2] sm:$0x3]  ;;  %vm728_vm5 = vcmask 1041408   ;;  %vm724_vm6 = vcmask 15360   ;;  %s170_s30 = scalar_lea.vmem %s1694_s3, %s1286_s14 }
  0x10   : > { %v1543_v0 = vld [vmem:[%s165_s17] sm:$0xff]  ;;  %v1545_v1 = vld [vmem:[%s165_s17 + $0x8] sm:$0xff]  ;;  %v1554_v7 = vld [vmem:[%s165_s17 + $0x10] sm:$0xff]  ;;  %v1433_v41 = vpack.c.bf16 %v328_v37, %v321_v36  ;;  %v730_v34 = vsel %vm728_vm5, %v723_v33, 0 }
  0x11   : > { %v1547_v2 = vld [vmem:[%s165_s17 + $0x20] sm:$0xff]  ;;  %v179_v3 = vmax.f32 %v1543_v0, 0.0  ;;  %v180_v4 = vmax.f32 %v1545_v1, 0.0  ;;  %v1551_v5 = vld [vmem:[%s165_s17 + $0x28] sm:$0xff]  ;;  %v1556_v8 = vld [vmem:[%s165_s17 + $0x18] sm:$0xff]  ;;  %v181_v10 = vmax.f32 %v1554_v7, 0.0  ;;  %v1436_v46 = vpack.c.bf16 %v342_v45, %v335_v44 }
  0x12   : > { %v183_v6 = vmax.f32 %v1547_v2, 0.0  ;;  %v184_v9 = vmax.f32 %v1551_v5, 0.0  ;;  %v182_v11 = vmax.f32 %v1556_v8, 0.0  ;;  %v1561_v12 = vld [vmem:[%s165_s17 + $0x30] sm:$0xff]  ;;  %v1563_v13 = vld [vmem:[%s165_s17 + $0x38] sm:$0xff]  ;;  %1434 = vmatpush3.bf16.msra.mxu0 %v1433_v41  ;;  %v733_v35 = vand.u32 4294901760, %v730_v34 }
  0x13   : > { %v187_v14 = vadd.f32 %v180_v4, %v179_v3  ;;  %v185_v15 = vmax.f32 %v1561_v12, 0.0  ;;  %v186_v16 = vmax.f32 %v1563_v13, 0.0  ;;  %1435 = vmatprep.subr.bf16.mxu0 %v1504_v38 }
  0x14   : > { %v193_v17 = vadd.f32 %v184_v9, %v183_v6  ;;  %v190_v18 = vadd.f32 %v182_v11, %v181_v10  ;;  %v810_v42 = vsub.f32 %v730_v34, %v733_v35 }
  0x15   : > { %188 = vadd.xlane.f32.xlu0 %v187_v14  ;;  %v196_v19 = vadd.f32 %v186_v16, %v185_v15  ;;  %v223_v14 = vsub.s32 %v220_v58, %v1625_v56 }
  0x16   : > { %194 = vadd.xlane.f32.xlu1 %v193_v17  ;;  %1437 = vmatpush3.bf16.msra.mxu0 %v1436_v46  ;;  %v230_v17 = vsub.s32 %v227_v59, %v1625_v56  ;;  %v811_v44 = vand.u32 4294901760, %v810_v42  ;;  %v1186_v59 = vsub.s32 0, %v1625_v56 }
  0x17   : > { %1438 = vmatprep.subr.bf16.mxu0 %v1504_v38 }
  0x19   : > { %191 = vadd.xlane.f32.xlu0 %v190_v18 }
  0x1a   : > { %197 = vadd.xlane.f32.xlu1 %v196_v19 }
  0xa2   : > { %v189_v60 = vpop.xlane.xlu0 %188 }
  0xa3   : > { %v195_v62 = vpop.xlane.xlu1 %194  ;;  %v212_v19 = vrot.slane %v189_v60, %v211_v61 }
  0xa4   : > { %v224_v22 = vrot.slane %v195_v62, %v223_v14 }
  0xa6   : > { %v192_v18 = vpop.xlane.xlu0 %191 }
  0xa7   : > { %v217_v20 = vrot.slane %v192_v18, %v216_v63  ;;  %v198_v21 = vpop.xlane.xlu1 %197 }
  0xa8   : > { %v231_v23 = vrot.slane %v198_v21, %v230_v17 }
  0xa9   : > { %v219_v24 = vsel %vm218_vm1, %v217_v20, %v212_v19 }
  0xaa   : > { %v226_v25 = vsel %vm225_vm2, %v224_v22, %v219_v24 }
  0xab   : > { %v233_v26 = vsel %vm232_vm3, %v231_v23, %v226_v25 }
  0xac   : > { %v235_v27 = vsel %vm234_vm4, %v233_v26, 0 }
  0xad   : > { %v306_v28 = vand.u32 4294901760, %v235_v27 }
  0xaf   : > { %v307_v29 = vsub.f32 %v235_v27, %v306_v28  ;;  %1350 = vmatmul.mubr.f32.vlgmr.msra.gmra.mrb[0].mxu0 %v306_v28 }
  0xb0   : > { %1440 = vmatpush3.bf16.msra.mxu0 %v1439_v48  ;;  %1360 = vmatprep.mubr.msk.f32.mxu0 %vm1505_vm0, %v1506_v47  ;;  %v812_v48 = vsub.f32 %v810_v42, %v811_v44 }
  0xb1   : > { %1441 = vmatprep.subr.bf16.mxu0 %v1504_v38  ;;  %v308_v30 = vand.u32 4294901760, %v307_v29 }
  0xb3   : > { %v309_v31 = vsub.f32 %v307_v29, %v308_v30 }
  0xb4   : > { %1443 = vmatpush3.bf16.msra.mxu0 %v1442_v50 }
  0xb5   : > { %1444 = vmatprep.subr.bf16.mxu0 %v1504_v38  ;;  %v310_v32 = vand.u32 4294901760, %v309_v31 }
  0xb7   : > { %1339 = vmatmul.mubr.f32.vlgmr.msra.gmra.mrb[0].mxu1 %v310_v32  ;;  %1361 = vmatmul.mubr.f32.vlgmr.msra.gmra.mrb[0].mxu0 %v307_v29 }
  0xb8   : > { %1446 = vmatpush3.bf16.msra.mxu0 %v1427_v49  ;;  %1371 = vmatprep.mubr.msk.f32.mxu0 %vm1505_vm0, %v1506_v47 }
  0xb9   : > { %1447 = vmatprep.subr.bf16.mxu0 %v1504_v38  ;;  %1398 = vmatprep.mubr.msk.f32.mxu1 %vm1505_vm0, %v1506_v47 }
  0xba   : > { %1397 = vmatpush3.msra.mxu1 %v733_v35 }
  0xbb   : > { %1401 = vmatprep.subr.mxu1 %v1506_v47 }
  0xbc   : > { %1449 = vmatpush3.bf16.msra.mxu0 %v1430_v51 }
  0xbd   : > { %1450 = vmatprep.subr.bf16.mxu0 %v1504_v38 }
  0xbf   : > { %1372 = vmatmul.mubr.f32.vlgmr.msra.gmra.mrb[0].mxu0 %v308_v30 }
  0xc0   : > { %1452 = vmatpush3.bf16.msra.mxu0 %v1451_v52  ;;  %1382 = vmatprep.mubr.msk.f32.mxu0 %vm1505_vm0, %v1506_v47 }
  0xc1   : > { %1453 = vmatprep.subr.bf16.mxu0 %v1504_v38 }
  0xc4   : > { %1455 = vmatpush3.bf16.msra.mxu0 %v1454_v53 }
  0xc5   : > { %1456 = vmatprep.subr.bf16.mxu0 %v1504_v38 }
  0xc7   : > { %1383 = vmatmul.mubr.f32.vlgmr.msra.gmra.mrb[0].mxu0 %v306_v28 }
  0xc8   : > { %1458 = vmatpush3.bf16.msra.mxu0 %v1427_v49  ;;  %1393 = vmatprep.mubr.msk.f32.mxu0 %vm1505_vm0, %v1506_v47 }
  0xc9   : > { %1459 = vmatprep.subr.bf16.mxu0 %v1504_v38 }
  0xcc   : > { %1461 = vmatpush3.bf16.msra.mxu0 %v1430_v51  ;;  %v813_v51 = vand.u32 4294901760, %v812_v48 }
  0xcf   : > { %1394 = vmatmul.mubr.f32.vlgmr.msra.gmra.mrb[0].mxu0 %v306_v28 }
 0x18a   : > { %v312_v36 = vpop.f32.mrb[0].mxu1 }
 0x18b   : > { %v1340_v37 = vpop.f32.mrb[1].mxu1 }
 0x1a2   : > { %v718_v39 = vpop.f32.mrb[0].mxu0 }
 0x1a3   : > { %v1462_v40 = vadd.f32 %v718_v39, %v312_v36  ;;  %v1395_v41 = vpop.f32.mrb[1].mxu0 }
 0x1a5   : > { %v722_v38 = vmax.f32 %v1462_v40, 0.0 }
 0x1a7   : > { %v726_v43 = vsel %vm724_vm6, %v722_v38, 0 }
 0x1a8   : > { %v798_v45 = vand.u32 4294901760, %v726_v43 }
 0x1aa   : > { %v799_v46 = vsub.f32 %v726_v43, %v798_v45 }
 0x1ac   : > { %v800_v49 = vand.u32 4294901760, %v799_v46 }
 0x1ae   : > { %v801_v50 = vsub.f32 %v799_v46, %v800_v49 }
 0x1b0   : > { %v802_v52 = vand.u32 4294901760, %v801_v50 }
 0x1b2   : > { %1399 = vmatmul.mubr.f32.vlgmr.msra.gmra.mrb[2].mxu1 %v802_v52 }
 0x1b3   : > { %1402 = vmatpush3.msra.mxu1 %v813_v51  ;;  %1403 = vmatprep.mubr.msk.f32.mxu1 %vm1505_vm0, %v1506_v47 }
 0x1b4   : > { %1406 = vmatprep.subr.mxu1 %v1506_v47 }
 0x1ba   : > { %1404 = vmatmul.mubr.f32.vlgmr.msra.gmra.mrb[2].mxu1 %v798_v45 }
 0x1bb   : > { %1407 = vmatpush3.msra.mxu1 %v810_v42  ;;  %1408 = vmatprep.mubr.msk.f32.mxu1 %vm1505_vm0, %v1506_v47 }
 0x1bc   : > { %1411 = vmatprep.subr.mxu1 %v1506_v47 }
 0x1c2   : > { %1409 = vmatmul.mubr.f32.vlgmr.msra.gmra.mrb[2].mxu1 %v799_v46 }
 0x1c3   : > { %1412 = vmatpush3.msra.mxu1 %v733_v35  ;;  %1413 = vmatprep.mubr.msk.f32.mxu1 %vm1505_vm0, %v1506_v47 }
 0x1c4   : > { %1416 = vmatprep.subr.mxu1 %v1506_v47 }
 0x1ca   : > { %1414 = vmatmul.mubr.f32.vlgmr.msra.gmra.mrb[2].mxu1 %v800_v49 }
 0x1cb   : > { %1417 = vmatpush3.msra.mxu1 %v811_v44  ;;  %1418 = vmatprep.mubr.msk.f32.mxu1 %vm1505_vm0, %v1506_v47 }
 0x1cc   : > { %1421 = vmatprep.subr.mxu1 %v1506_v47 }
 0x1d2   : > { %1419 = vmatmul.mubr.f32.vlgmr.msra.gmra.mrb[2].mxu1 %v798_v45 }
 0x1d3   : > { %1422 = vmatpush3.msra.mxu1 %v733_v35  ;;  %1423 = vmatprep.mubr.msk.f32.mxu1 %vm1505_vm0, %v1506_v47 }
 0x1da   : > { %1424 = vmatmul.mubr.f32.vlgmr.msra.gmra.mrb[2].mxu1 %v798_v45 }
 0x2ad   : > { %v1174_v53 = vpop.f32.mrb[2].mxu1 }
 0x2ae   : > { %v1283_v54 = vmul.f32 -1.442695, %v1174_v53  ;;  %v1425_v55 = vpop.f32.mrb[3].mxu1 }
 0x2b0   : > { %1492 = vpow2.f32 %v1283_v54 }
 0x2ba   : > { %v1493_v57 = vpop.eup %1492 }
 0x2bb   : > { %v1181_v58 = vadd.f32 1.0, %v1493_v57 }
 0x2bd   : > { %1494 = vrcp.f32 %v1181_v58 }
 0x2c7   : > { %v1495_v60 = vpop.eup %1494 }
 0x2c8   : > { %v1187_v61 = vrot.slane %v1495_v60, %v1186_v59 }
 0x2ca   : > { %1193 = vbcast.lane.b32.xlu1 %v1187_v61, 264  ;;  %1189 = vbcast.lane.b32.xlu0 %v1187_v61, 256 }
 0x2ce   : > { %1197 = vbcast.lane.b32.xlu1 %v1187_v61, 272 }
 0x2d2   : > { %1201 = vbcast.lane.b32.xlu1 %v1187_v61, 280 }
 0x33c   : > { %v1194_v47 = vpop.permute.xlu1 %1193  ;;  %v1190_v62 = vpop.permute.xlu0 %1189 }
 0x33d   : > { %v1205_v63 = vmul.f32 %v1194_v47, %v181_v10  ;;  %v1206_v14 = vmul.f32 %v1194_v47, %v182_v11  ;;  %v1203_v56 = vmul.f32 %v1190_v62, %v179_v3  ;;  %v1204_v17 = vmul.f32 %v1190_v62, %v180_v4 }
 0x33f   : > { %1213 = vst [vmem:[%s170_s30 + $0x10] sm:$0xff] %v1205_v63  ;;  %1214 = vst [vmem:[%s170_s30 + $0x18] sm:$0xff] %v1206_v14 }
 0x340   : > { %1211 = vst [vmem:[%s170_s30] sm:$0xff] %v1203_v56  ;;  %1212 = vst [vmem:[%s170_s30 + $0x8] sm:$0xff] %v1204_v17  ;;  %v1198_v18 = vpop.permute.xlu1 %1197 }
 0x341   : > { %v1207_v19 = vmul.f32 %v1198_v18, %v183_v6  ;;  %v1208_v7 = vmul.f32 %v1198_v18, %v184_v9 }
 0x343   : > { %1215 = vst [vmem:[%s170_s30 + $0x20] sm:$0xff] %v1207_v19  ;;  %1216 = vst [vmem:[%s170_s30 + $0x28] sm:$0xff] %v1208_v7 }
 0x344   : > { %v1202_v8 = vpop.permute.xlu1 %1201 }
 0x345   : > { %v1209_v0 = vmul.f32 %v1202_v8, %v185_v15  ;;  %v1210_v1 = vmul.f32 %v1202_v8, %v186_v16 }
 0x347   : > { %1217 = vst [vmem:[%s170_s30 + $0x30] sm:$0xff] %v1209_v0  ;;  %1218 = vst [vmem:[%s170_s30 + $0x38] sm:$0xff] %v1210_v1 }
 0x348 PF: > { %s13_s12 = sadd.s32 1, %s1502_s12  }
 0x349   : > { %p10_p4 = scmp.ge.s32.totalorder %s13_s12, 4  }
 0x34b   :  { %12 = sbr.rel (!%p10_p4) target bundleno = 1 (0x1), region = 62 }

</bundles_post_ra>
